<compile_context>
chip_gen: v7x
topology: tpu7x:2x2x1
jax: 0.10.0
libtpu: 0.0.40
codegen_flags: <defaults>
</compile_context>

<pallas_src>
import functools
import math

import jax
import jax.numpy as jnp
from jax import lax
from jax.experimental import pallas as pl
from jax.experimental.pallas import tpu as pltpu


# ----------------------------------------------------------------------------
# Fused (sign-binarize + bf16 MXU matmul) kernel
# ----------------------------------------------------------------------------
def _conv_matmul_kernel(a_ref, w_ref, o_ref, *, scale, binarize):
    """One M-tile of  out = (A_bf16 @ binarize(W)_bf16) * scale,  f32 accumulate.

    a_ref: (tm, K) bf16  im2col activation tile (A streamed exactly once)
    w_ref: (K, O)  f32   raw conv weight, VMEM-resident (constant index_map)
    o_ref: (tm, O) f32
    """
    w = w_ref[...]
    if binarize:
        # ForwardSign fused into the matmul: exact +-1 bf16 weights for the MXU,
        # He scale folded into the f32 epilogue.  The two-select is VPU filler
        # that hides under the MXU slot.
        wq = jnp.where(w > 0, 1.0, jnp.where(w < 0, -1.0, 0.0)).astype(jnp.bfloat16)
    else:
        wq = w.astype(jnp.bfloat16)
    acc = jnp.dot(a_ref[...], wq, preferred_element_type=jnp.float32)
    if scale != 1.0:
        acc = acc * scale
    o_ref[...] = acc.astype(o_ref.dtype)


def _pick_tm(M, K, O, max_tm=512, budget_bytes=20 * 1024 * 1024):
    """Largest M-tile (multiple of 8, divides M) fitting the VMEM budget.

    Budget: double-buffered A tile (bf16) + resident W (f32, 2 bufs) + output
    tile (f32, 2 bufs).  Kept well under v7x's 32 MiB scoped / 64 MiB physical.
    Prefers >=2 grid blocks so both v7x TensorCores get work.
    """
    def vmem(tm):
        return 2 * tm * K * 2 + 2 * K * O * 4 + 2 * tm * O * 4

    cands = [tm for tm in range(8, min(max_tm, M) + 1, 8)
             if M % tm == 0 and vmem(tm) <= budget_bytes]
    if not cands:
        return M                     # tiny/awkward M: single full-extent block
    tm = max(cands)
    if M // tm == 1:
        two = [t for t in cands if M // t >= 2]
        if two:
            tm = max(two)
    return tm


def _fused_matmul(a, w_mat, *, scale, binarize):
    """(M, K) bf16  x  (K, O) f32 (sign fused in-kernel)  ->  (M, O) f32."""
    M, K = a.shape
    K2, O = w_mat.shape
    assert K == K2
    tm = _pick_tm(M, K, O)
    cost = pl.CostEstimate(flops=2 * M * K * O, transcendentals=0,
                           bytes_accessed=M * K * 2 + K * O * 4 + M * O * 4)
    return pl.pallas_call(
        functools.partial(_conv_matmul_kernel, scale=scale, binarize=binarize),
        out_shape=jax.ShapeDtypeStruct((M, O), jnp.float32),
        grid=(M // tm,),
        in_specs=[
            pl.BlockSpec((tm, K), lambda i: (i, 0)),   # A streamed exactly once
            pl.BlockSpec((K, O), lambda i: (0, 0)),    # W resident (idx constant)
        ],
        out_specs=pl.BlockSpec((tm, O), lambda i: (i, 0)),
        compiler_params=pltpu.CompilerParams(
            dimension_semantics=("parallel",),
            vmem_limit_bytes=32 * 1024 * 1024),
        cost_estimate=cost,
    )(a, w_mat)


def conv2d_pallas(x_nhwc, w_oihw, *, stride, padding=1, binarize=False):
    """3x3 conv (NHWC activations, OIHW weight) via fused-sign bf16 Pallas matmul.

    im2col stays NHWC: 9 strided slices of the padded input concatenated along
    the channel (lane) axis — no 6-D transpose, no A padding, one A round trip.
    """
    N, H, W, C = x_nhwc.shape
    O, C2, KH, KW = w_oihw.shape
    assert C == C2 and (KH, KW) == (3, 3) and padding == 1
    OH = (H + 2 * padding - KH) // stride + 1
    OW = (W + 2 * padding - KW) // stride + 1

    xq = x_nhwc.astype(jnp.bfloat16)                       # MXU-native operand dtype
    xp = jnp.pad(xq, ((0, 0), (padding, padding), (padding, padding), (0, 0)))
    taps = [xp[:, kh:kh + stride * (OH - 1) + 1:stride,
                  kw:kw + stride * (OW - 1) + 1:stride, :]
            for kh in range(KH) for kw in range(KW)]
    a = jnp.concatenate(taps, axis=-1).reshape(N * OH * OW, KH * KW * C)

    # (O, C, KH, KW) -> (KH*KW*C, O): rows match the (kh, kw, c) tap ordering.
    w_mat = jnp.transpose(w_oihw, (2, 3, 1, 0)).reshape(KH * KW * C, O)
    scale = math.sqrt(2.0 / (C * KH * KW)) if binarize else 1.0

    out = _fused_matmul(a, w_mat, scale=scale, binarize=binarize)
    return out.reshape(N, OH, OW, O)                       # already NHWC-flat


# ----------------------------------------------------------------------------
# Plain-JAX pieces (mem-bound elementwise / reductions; XLA fuses these), NHWC
# ----------------------------------------------------------------------------
def batchnorm2d_nhwc(x, eps=1e-5):
    # nn.BatchNorm2d(affine=False) forward with batch statistics (train mode).
    # TODO(synk): running-stat tracking / eval mode not implemented.
    mean = jnp.mean(x, axis=(0, 1, 2), keepdims=True)
    var = jnp.var(x, axis=(0, 1, 2), keepdims=True)
    return (x - mean) * lax.rsqrt(var + eps)


def avg_pool2d_3x3_s2_nhwc(x):
    # F.avg_pool2d(kernel=3, stride=2, padding=1), count_include_pad=True -> /9
    s = lax.reduce_window(x, 0.0, lax.add,
                          window_dimensions=(1, 3, 3, 1),
                          window_strides=(1, 2, 2, 1),
                          padding=((0, 0), (1, 1), (1, 1), (0, 0)))
    return s / 9.0


# ----------------------------------------------------------------------------
# DownsampleBlock
# ----------------------------------------------------------------------------
def _kaiming_normal(key, shape):
    # kaiming_normal_(mode='fan_out', nonlinearity='relu')
    O, _, KH, KW = shape
    std = math.sqrt(2.0 / (O * KH * KW))
    return std * jax.random.normal(key, shape, dtype=jnp.float32)


class DownsampleBlock:
    """JAX/Pallas port of wrn_mcdonnell.DownsampleBlock forward pass.

    NCHW at the module boundary (PyTorch semantics); NHWC internally so the
    per-channel BN reduction and conv matmuls are lane-dense and there are no
    per-conv layout transposes.
    TODO(synk): ForwardSign straight-through backward not implemented (fwd only).
    """

    def __init__(self, width, key, binarize=False):
        k0, k1 = jax.random.split(key)
        self.binarize = binarize
        self.conv0 = _kaiming_normal(k0, (width, width // 2, 3, 3))
        self.conv1 = _kaiming_normal(k1, (width, width, 3, 3))

    def forward_nhwc(self, x):
        h = conv2d_pallas(jax.nn.relu(batchnorm2d_nhwc(x)), self.conv0,
                          stride=2, binarize=self.binarize)
        h = conv2d_pallas(jax.nn.relu(batchnorm2d_nhwc(h)), self.conv1,
                          stride=1, binarize=self.binarize)
        x_d = avg_pool2d_3x3_s2_nhwc(x)
        x_d = jnp.concatenate([x_d, jnp.zeros_like(x_d)], axis=-1)
        return x_d + h

    def __call__(self, x_nchw):
        x = jnp.transpose(x_nchw, (0, 2, 3, 1))
        return jnp.transpose(self.forward_nhwc(x), (0, 3, 1, 2))


# ----------------------------------------------------------------------------
# Pure-XLA reference (mirrors the kernel's bf16 quantization points)
# ----------------------------------------------------------------------------
def _sign_ref(w):
    return math.sqrt(2.0 / (w.shape[1] * w.shape[2] * w.shape[3])) * jnp.sign(w)


def _conv2d_ref_nhwc(x_nhwc, w_oihw, stride, binarize):
    w = _sign_ref(w_oihw) if binarize else w_oihw
    w_hwio = jnp.transpose(w, (2, 3, 1, 0))
    xq = x_nhwc.astype(jnp.bfloat16).astype(jnp.float32)   # same quantization as kernel
    return lax.conv_general_dilated(
        xq, w_hwio, window_strides=(stride, stride), padding=((1, 1), (1, 1)),
        dimension_numbers=("NHWC", "HWIO", "NHWC"),
        precision=lax.Precision.HIGHEST)


def downsample_block_ref_nhwc(x, conv0, conv1, binarize):
    h = _conv2d_ref_nhwc(jax.nn.relu(batchnorm2d_nhwc(x)), conv0, 2, binarize)
    h = _conv2d_ref_nhwc(jax.nn.relu(batchnorm2d_nhwc(h)), conv1, 1, binarize)
    x_d = avg_pool2d_3x3_s2_nhwc(x)
    x_d = jnp.concatenate([x_d, jnp.zeros_like(x_d)], axis=-1)
    return x_d + h


if __name__ == "__main__":
    key = jax.random.PRNGKey(0)
    k_x, k_blk = jax.random.split(key)

    # Small shapes consistent with the module: width=8 -> input has width//2=4 ch.
    width = 8
    x_nchw = jax.random.normal(k_x, (2, width // 2, 16, 16), dtype=jnp.float32)

    blk = DownsampleBlock(width, k_blk, binarize=True)
    out = jax.block_until_ready(jax.jit(blk)(x_nchw))
    assert out.shape == (2, width, 8, 8) and out.dtype == jnp.float32

    # End-to-end check against an XLA reference using the same bf16 activation
    # quantization points (remaining diff: f32 accumulation order).
    x_nhwc = jnp.transpose(x_nchw, (0, 2, 3, 1))
    ref_nhwc = jax.block_until_ready(
        downsample_block_ref_nhwc(x_nhwc, blk.conv0, blk.conv1, True))
    ref_nchw = jnp.transpose(ref_nhwc, (0, 3, 1, 2))
    err = float(jnp.max(jnp.abs(out - ref_nchw)))
    assert jnp.allclose(out, ref_nchw, atol=1e-2, rtol=1e-2), \
        f"DownsampleBlock mismatch, max|err|={err}"

    # Direct check of the fused conv kernel (tight tolerance).
    act = jax.nn.relu(batchnorm2d_nhwc(x_nhwc))
    got_c = jax.block_until_ready(
        conv2d_pallas(act, blk.conv0, stride=2, binarize=True))
    ref_c = _conv2d_ref_nhwc(act, blk.conv0, 2, True)
    assert got_c.shape == ref_c.shape and got_c.dtype == jnp.float32
    assert jnp.allclose(got_c, ref_c, atol=1e-3, rtol=1e-3), \
        "fused sign-conv kernel mismatch"

    # binarize=False path still runs (weights cast to bf16 in-kernel).
    blk_plain = DownsampleBlock(width, k_blk, binarize=False)
    _ = jax.block_until_ready(jax.jit(blk_plain)(x_nchw))

    print("KERNEL_OK")
</pallas_src>

<mosaic_0001>
module attributes {stable_mosaic.version = 11 : i64} {
  func.func @_conv_matmul_kernel(%arg0: i32, %arg1: memref<64x36xbf16, #tpu.memory_space<vmem>>, %arg2: memref<36x8xf32, #tpu.memory_space<vmem>>, %arg3: memref<64x8xf32, #tpu.memory_space<vmem>>) attributes {dimension_semantics = [#tpu.dimension_semantics<parallel>], iteration_bounds = array<i64: 2>, scalar_prefetch = 0 : i64, scratch_operands = 0 : i64, tpu.core_type = #tpu.core_type<tc>, window_params = [{transform_indices = @transform_0, window_bounds = array<i64: 64, 36>}, {pipeline_mode = #tpu.pipeline_mode<synchronous>, transform_indices = @transform_1, window_bounds = array<i64: 36, 8>}, {transform_indices = @transform_2, window_bounds = array<i64: 64, 8>}]} {
    %c0 = arith.constant 0 : index
    %c0_0 = arith.constant 0 : index
    %0 = vector.load %arg2[%c0, %c0_0] : memref<36x8xf32, #tpu.memory_space<vmem>>, vector<36x8xf32>
    %cst = arith.constant 0.000000e+00 : f32
    %1 = vector.broadcast %cst : f32 to vector<36x8xf32>
    %2 = arith.cmpf ogt, %0, %1 : vector<36x8xf32>
    %cst_1 = arith.constant 0.000000e+00 : f32
    %3 = vector.broadcast %cst_1 : f32 to vector<36x8xf32>
    %4 = arith.cmpf olt, %0, %3 : vector<36x8xf32>
    %cst_2 = arith.constant -1.000000e+00 : f32
    %cst_3 = arith.constant 0.000000e+00 : f32
    %5 = vector.broadcast %cst_2 : f32 to vector<36x8xf32>
    %6 = vector.broadcast %cst_3 : f32 to vector<36x8xf32>
    %7 = arith.select %4, %5, %6 : vector<36x8xi1>, vector<36x8xf32>
    %cst_4 = arith.constant 1.000000e+00 : f32
    %8 = vector.broadcast %cst_4 : f32 to vector<36x8xf32>
    %9 = arith.select %2, %8, %7 : vector<36x8xi1>, vector<36x8xf32>
    %10 = arith.truncf %9 : vector<36x8xf32> to vector<36x8xbf16>
    %c0_5 = arith.constant 0 : index
    %c0_6 = arith.constant 0 : index
    %11 = vector.load %arg1[%c0_5, %c0_6] : memref<64x36xbf16, #tpu.memory_space<vmem>>, vector<64x36xbf16>
    %cst_7 = arith.constant dense<0.000000e+00> : vector<64x8xf32>
    %12 = tpu.matmul %11, %10, %cst_7 {dimension_numbers = #tpu.dot_dimension_numbers<[1], [0], [0], [1], [0, 0, 1, 1], [], []>} : vector<64x36xbf16>, vector<36x8xbf16>, vector<64x8xf32> -> vector<64x8xf32>
    %cst_8 = arith.constant 0.235702261 : f32
    %13 = vector.broadcast %cst_8 : f32 to vector<64x8xf32>
    %14 = arith.mulf %12, %13 : vector<64x8xf32>
    %c0_9 = arith.constant 0 : index
    %c0_10 = arith.constant 0 : index
    %15 = vector.load %arg3[%c0_9, %c0_10] : memref<64x8xf32, #tpu.memory_space<vmem>>, vector<64x8xf32>
    tpu.vector_store %arg3[%c0_9, %c0_10], %14 {strides = array<i32>} : memref<64x8xf32, #tpu.memory_space<vmem>>, vector<64x8xf32>,
    return
  }
  func.func @transform_0(%arg0: i32) -> (i32, i32) {
    %c0_i32 = arith.constant 0 : i32
    %c0_i32_0 = arith.constant 0 : i32
    return %arg0, %c0_i32 : i32, i32
  }
  func.func @transform_1(%arg0: i32) -> (i32, i32) {
    %c0_i32 = arith.constant 0 : i32
    %c0_i32_0 = arith.constant 0 : i32
    %c0_i32_1 = arith.constant 0 : i32
    return %c0_i32, %c0_i32_0 : i32, i32
  }
  func.func @transform_2(%arg0: i32) -> (i32, i32) {
    %c0_i32 = arith.constant 0 : i32
    %c0_i32_0 = arith.constant 0 : i32
    return %arg0, %c0_i32 : i32, i32
  }
}

module attributes {stable_mosaic.version = 11 : i64} {
  func.func @_conv_matmul_kernel(%arg0: i32, %arg1: memref<64x72xbf16, #tpu.memory_space<vmem>>, %arg2: memref<72x8xf32, #tpu.memory_space<vmem>>, %arg3: memref<64x8xf32, #tpu.memory_space<vmem>>) attributes {dimension_semantics = [#tpu.dimension_semantics<parallel>], iteration_bounds = array<i64: 2>, scalar_prefetch = 0 : i64, scratch_operands = 0 : i64, tpu.core_type = #tpu.core_type<tc>, window_params = [{transform_indices = @transform_0, window_bounds = array<i64: 64, 72>}, {pipeline_mode = #tpu.pipeline_mode<synchronous>, transform_indices = @transform_1, window_bounds = array<i64: 72, 8>}, {transform_indices = @transform_2, window_bounds = array<i64: 64, 8>}]} {
    %c0 = arith.constant 0 : index
    %c0_0 = arith.constant 0 : index
    %0 = vector.load %arg2[%c0, %c0_0] : memref<72x8xf32, #tpu.memory_space<vmem>>, vector<72x8xf32>
    %cst = arith.constant 0.000000e+00 : f32
    %1 = vector.broadcast %cst : f32 to vector<72x8xf32>
    %2 = arith.cmpf ogt, %0, %1 : vector<72x8xf32>
    %cst_1 = arith.constant 0.000000e+00 : f32
    %3 = vector.broadcast %cst_1 : f32 to vector<72x8xf32>
    %4 = arith.cmpf olt, %0, %3 : vector<72x8xf32>
    %cst_2 = arith.constant -1.000000e+00 : f32
    %cst_3 = arith.constant 0.000000e+00 : f32
    %5 = vector.broadcast %cst_2 : f32 to vector<72x8xf32>
    %6 = vector.broadcast %cst_3 : f32 to vector<72x8xf32>
    %7 = arith.select %4, %5, %6 : vector<72x8xi1>, vector<72x8xf32>
    %cst_4 = arith.constant 1.000000e+00 : f32
    %8 = vector.broadcast %cst_4 : f32 to vector<72x8xf32>
    %9 = arith.select %2, %8, %7 : vector<72x8xi1>, vector<72x8xf32>
    %10 = arith.truncf %9 : vector<72x8xf32> to vector<72x8xbf16>
    %c0_5 = arith.constant 0 : index
    %c0_6 = arith.constant 0 : index
    %11 = vector.load %arg1[%c0_5, %c0_6] : memref<64x72xbf16, #tpu.memory_space<vmem>>, vector<64x72xbf16>
    %cst_7 = arith.constant dense<0.000000e+00> : vector<64x8xf32>
    %12 = tpu.matmul %11, %10, %cst_7 {dimension_numbers = #tpu.dot_dimension_numbers<[1], [0], [0], [1], [0, 0, 1, 1], [], []>} : vector<64x72xbf16>, vector<72x8xbf16>, vector<64x8xf32> -> vector<64x8xf32>
    %cst_8 = arith.constant 0.166666672 : f32
    %13 = vector.broadcast %cst_8 : f32 to vector<64x8xf32>
    %14 = arith.mulf %12, %13 : vector<64x8xf32>
    %c0_9 = arith.constant 0 : index
    %c0_10 = arith.constant 0 : index
    %15 = vector.load %arg3[%c0_9, %c0_10] : memref<64x8xf32, #tpu.memory_space<vmem>>, vector<64x8xf32>
    tpu.vector_store %arg3[%c0_9, %c0_10], %14 {strides = array<i32>} : memref<64x8xf32, #tpu.memory_space<vmem>>, vector<64x8xf32>,
    return
  }
  func.func @transform_0(%arg0: i32) -> (i32, i32) {
    %c0_i32 = arith.constant 0 : i32
    %c0_i32_0 = arith.constant 0 : i32
    return %arg0, %c0_i32 : i32, i32
  }
  func.func @transform_1(%arg0: i32) -> (i32, i32) {
    %c0_i32 = arith.constant 0 : i32
    %c0_i32_0 = arith.constant 0 : i32
    %c0_i32_1 = arith.constant 0 : i32
    return %c0_i32, %c0_i32_0 : i32, i32
  }
  func.func @transform_2(%arg0: i32) -> (i32, i32) {
    %c0_i32 = arith.constant 0 : i32
    %c0_i32_0 = arith.constant 0 : i32
    return %arg0, %c0_i32 : i32, i32
  }
}

</mosaic_0001>

<bundles_post_ra>
// kernel: _unnamed_function_.2
= control target key start
LH: loop header
LB: loop body
LE: loop exit
PB: predicated region body
PF: predicated region fallthrough
CT: control target
= control target key end

     0   :  { %s444_s9 = smov 0   ;;  %s492_s0 = inlined_call_operand.vmem [shape: bf16[128,36], index: 0, kind: input, shape index: {}]   ;;  %s493_s1 = inlined_call_operand.vmem [shape: f32[36,8], index: 1, kind: input, shape index: {}]   ;;  %s494_s2 = inlined_call_operand.vmem [shape: f32[128,8], index: 2, kind: output, shape index: {}]  }
   0x1 LB: > { %s359_s10 = sadd.s32 4294967295, %s426_s9   ;;  %p363_p0 = scmp.ge.s32.totalorder %s426_s9, 1  ;;  %s426_s9 = sphi %s444_s9, %s12_s9  }
   0x2   : > { %p113_p1 = scmp.lt.s32.totalorder %s426_s9, 3 }
   0x4   : > { %p114_p2 = pnand %p363_p0, %p113_p1 }
   0x5   : > { %v148_v0 = vld [vmem:[%s493_s1] sm:$0xff] (!%p114_p2)  ;;  %v149_v1 = vld [vmem:[%s493_s1 + $0x8] sm:$0xff] (!%p114_p2)  ;;  %v150_v2 = vld [vmem:[%s493_s1 + $0x10] sm:$0xff] (!%p114_p2)  ;;  %s364_s17 = sshll.u32 (!%p114_p2), %s359_s10, 3  ;;  %v428_v4 = vmov (!%p114_p2), 0.0   ;;  %vm204_vm10 = vcmask (!%p114_p2), 293888  }
   0x6   : > { %117 = sbr.rel (%p114_p2) target bundleno = 242 (0xf2), region = 28  ;;  %vm153_vm0 = vcmp.gt.f32.partialorder (!%p114_p2), %v148_v0, 0.0  ;;  %vm154_vm1 = vcmp.gt.f32.partialorder (!%p114_p2), %v149_v1, 0.0  ;;  %vm158_vm2 = vcmp.lt.f32.partialorder (!%p114_p2), %v148_v0, 0.0  ;;  %vm159_vm3 = vcmp.lt.f32.partialorder (!%p114_p2), %v149_v1, 0.0  ;;  %v151_v3 = vld [vmem:[%s493_s1 + $0x18] sm:$0xff] (!%p114_p2) }
   0x7   : > { %p136_p3 = scmp.lt.s32.totalorder (!%p114_p2), %s364_s17, 15  ;;  %v163_v5 = vsel (!%p114_p2), %vm158_vm2, -1.0, %v428_v4  ;;  %v164_v6 = vsel (!%p114_p2), %vm159_vm3, -1.0, %v428_v4  ;;  %vm155_vm4 = vcmp.gt.f32.partialorder (!%p114_p2), %v150_v2, 0.0  ;;  %vm156_vm5 = vcmp.gt.f32.partialorder (!%p114_p2), %v151_v3, 0.0 }
   0x8   : > { %v152_v7 = vld [vmem:[%s493_s1 + $0x20] sm:$0xf] (!%p114_p2)  ;;  %v168_v8 = vsel (!%p114_p2), %vm153_vm0, 1.0, %v163_v5  ;;  %v169_v9 = vsel (!%p114_p2), %vm154_vm1, 1.0, %v164_v6  ;;  %vm160_vm6 = vcmp.lt.f32.partialorder (!%p114_p2), %v150_v2, 0.0  ;;  %vm161_vm7 = vcmp.lt.f32.partialorder (!%p114_p2), %v151_v3, 0.0 }
   0x9   : > { %v173_v10 = vpack.c.bf16 (!%p114_p2), %v169_v9, %v168_v8  ;;  %v165_v11 = vsel (!%p114_p2), %vm160_vm6, -1.0, %v428_v4  ;;  %v166_v12 = vsel (!%p114_p2), %vm161_vm7, -1.0, %v428_v4  ;;  %vm157_vm8 = vcmp.gt.f32.partialorder (!%p114_p2), %v152_v7, 0.0 }
   0xa   : > { %v170_v13 = vsel (!%p114_p2), %vm155_vm4, 1.0, %v165_v11  ;;  %v171_v14 = vsel (!%p114_p2), %vm156_vm5, 1.0, %v166_v12  ;;  %vm162_vm9 = vcmp.lt.f32.partialorder (!%p114_p2), %v152_v7, 0.0  ;;  %vm217_vm11 = vcmask (!%p114_p2), 1041408  }
   0xb   : > { %385 = vmatprep.subr.bf16.mxu0 (!%p114_p2), %v173_v10  ;;  %399 = vmatprep.subr.bf16.mxu1 (!%p114_p2), %v173_v10  ;;  %v174_v15 = vpack.c.bf16 (!%p114_p2), %v171_v14, %v170_v13  ;;  %v167_v16 = vsel (!%p114_p2), %vm162_vm9, -1.0, %v428_v4  ;;  %vm294_vm12 = vcmask (!%p114_p2), 64512  }
   0xc   : > { %386 = vmatpush3.bf16.msra.mxu0 (!%p114_p2), %v173_v10  ;;  %402 = vmatpush3.bf16.msra.mxu1 (!%p114_p2), %v173_v10  ;;  %v172_v17 = vsel (!%p114_p2), %vm157_vm8, 1.0, %v167_v16 }
   0xd   : > { %s496_s17 = smov (!%p136_p3, %s364_s17), 15  ;;  %387 = vmatprep.subr.bf16.mxu0 %v174_v15  ;;  %400 = vmatprep.subr.bf16.mxu1 %v174_v15  ;;  %v175_v19 = vpack.c.bf16 %v172_v17, %v172_v17 }
   0xe   : > { %s365_s22 = sshll.u32 %s496_s17, 2  ;;  %s367_s26 = sshll.u32 %s496_s17, 3 }
   0xf   : > { %s139_s25 = scalar_lea.vmem %s492_s0, %s365_s22  ;;  %v219_v21 = vsel %vm217_vm11, %v175_v19, 0  ;;  %s145_s29 = scalar_lea.vmem %s494_s2, %s367_s26 }
  0x10   : > { %v416_v18 = vld [vmem:[%s139_s25] sm:$0xff]   ;;  %v417_v20 = vld [vmem:[%s139_s25 + $0x10] sm:$0xff]   ;;  %388 = vmatpush3.bf16.msra.mxu0 %v174_v15  ;;  %403 = vmatpush3.bf16.msra.mxu1 %v174_v15  ;;  %v418_v22 = vld [vmem:[%s139_s25 + $0x8] sm:$0xff]  }
  0x11   : > { %391 = vmatprep.mubr.msk.bf16.mxu0 %vm204_vm10, %v416_v18  ;;  %395 = vmatprep.mubr.msk.bf16.mxu1 %vm204_vm10, %v417_v20  ;;  %v419_v23 = vld [vmem:[%s139_s25 + $0x18] sm:$0xff]  }
  0x12   : > { %405 = vmatprep.subr.msk.bf16.mxu0 %vm217_vm11, %v175_v19  ;;  %406 = vmatprep.subr.msk.bf16.mxu1 %vm217_vm11, %v175_v19 }
  0x14   : > { %390 = vmatpush3.bf16.msra.mxu0 %v219_v21  ;;  %404 = vmatpush3.bf16.msra.mxu1 %v219_v21 }
  0x17   : > { %392 = vmatmul.mubr.msk.bf16.vlgmr.msra.gmra.mrb[0].mxu0 %vm204_vm10, %v418_v22  ;;  %396 = vmatmul.mubr.msk.bf16.vlgmr.msra.gmra.mrb[0].mxu1 %vm204_vm10, %v419_v23 }
  0xea   : > { %v393_v24 = vpop.f32.mrb[0].mxu0  ;;  %v397_v25 = vpop.f32.mrb[0].mxu1 }
  0xeb   : > { %v288_v26 = vmul.f32 0.23570226, %v393_v24  ;;  %v292_v27 = vmul.f32 0.23570226, %v397_v25  ;;  %v255_v28 = vpop.f32.mrb[1].mxu0  ;;  %v271_v29 = vpop.f32.mrb[1].mxu1 }
  0xec   : > { %v286_v30 = vmul.f32 0.23570226, %v255_v28  ;;  %v290_v31 = vmul.f32 0.23570226, %v271_v29  ;;  %v394_v32 = vpop.f32.mrb[2].mxu0  ;;  %v398_v33 = vpop.f32.mrb[2].mxu1 }
  0xed   : > { %297 = vst.msk [vmem:[%s145_s29 + $0x10] sm:$0xff] %vm294_vm12, %v288_v26  ;;  %301 = vst.msk [vmem:[%s145_s29 + $0x30] sm:$0xff] %vm294_vm12, %v292_v27  ;;  %v289_v34 = vmul.f32 0.23570226, %v394_v32  ;;  %v293_v35 = vmul.f32 0.23570226, %v398_v33 }
  0xee   : > { %v258_v36 = vpop.f32.mrb[3].mxu0  ;;  %v274_v37 = vpop.f32.mrb[3].mxu1  ;;  %295 = vst.msk [vmem:[%s145_s29] sm:$0xff] %vm294_vm12, %v286_v30  ;;  %299 = vst.msk [vmem:[%s145_s29 + $0x20] sm:$0xff] %vm294_vm12, %v290_v31 }
  0xef   : > { %v287_v38 = vmul.f32 0.23570226, %v258_v36  ;;  %v291_v39 = vmul.f32 0.23570226, %v274_v37  ;;  %298 = vst.msk [vmem:[%s145_s29 + $0x18] sm:$0xff] %vm294_vm12, %v289_v34  ;;  %302 = vst.msk [vmem:[%s145_s29 + $0x38] sm:$0xff] %vm294_vm12, %v293_v35 }
  0xf1   : > { %296 = vst.msk [vmem:[%s145_s29 + $0x8] sm:$0xff] %vm294_vm12, %v287_v38  ;;  %300 = vst.msk [vmem:[%s145_s29 + $0x28] sm:$0xff] %vm294_vm12, %v291_v39 }
  0xf2 PF: > { %s12_s9 = sadd.s32 1, %s426_s9  }
  0xf3   : > { %p9_p4 = scmp.ge.s32.totalorder %s12_s9, 4  }
  0xf5   :  { %11 = sbr.rel (!%p9_p4) target bundleno = 1 (0x1), region = 58 }

// kernel: _unnamed_function_.3
= control target key start
LH: loop header
LB: loop body
LE: loop exit
PB: predicated region body
PF: predicated region fallthrough
CT: control target
= control target key end

     0   :  { %s476_s9 = smov 0   ;;  %s544_s0 = inlined_call_operand.vmem [shape: bf16[128,72], index: 0, kind: input, shape index: {}]   ;;  %s545_s1 = inlined_call_operand.vmem [shape: f32[72,8], index: 1, kind: input, shape index: {}]   ;;  %s546_s2 = inlined_call_operand.vmem [shape: f32[128,8], index: 2, kind: output, shape index: {}]  }
   0x1 LB: > { %s381_s10 = sadd.s32 4294967295, %s458_s9   ;;  %p385_p0 = scmp.ge.s32.totalorder %s458_s9, 1  ;;  %s458_s9 = sphi %s476_s9, %s12_s9  }
   0x2   : > { %p113_p1 = scmp.lt.s32.totalorder %s458_s9, 3 }
   0x4   : > { %p114_p2 = pnand %p385_p0, %p113_p1 }
   0x5   : > { %v148_v0 = vld [vmem:[%s545_s1] sm:$0xff] (!%p114_p2)  ;;  %v149_v1 = vld [vmem:[%s545_s1 + $0x8] sm:$0xff] (!%p114_p2)  ;;  %v150_v2 = vld [vmem:[%s545_s1 + $0x10] sm:$0xff] (!%p114_p2)  ;;  %s493_s17 = sshll.u32 (!%p114_p2), %s381_s10, 3  ;;  %v460_v5 = vmov (!%p114_p2), 0.0  }
   0x6   : > { %117 = sbr.rel (%p114_p2) target bundleno = 250 (0xfa), region = 28  ;;  %vm157_vm0 = vcmp.gt.f32.partialorder (!%p114_p2), %v148_v0, 0.0  ;;  %vm158_vm1 = vcmp.gt.f32.partialorder (!%p114_p2), %v149_v1, 0.0  ;;  %vm166_vm2 = vcmp.lt.f32.partialorder (!%p114_p2), %v148_v0, 0.0  ;;  %vm167_vm3 = vcmp.lt.f32.partialorder (!%p114_p2), %v149_v1, 0.0  ;;  %v151_v3 = vld [vmem:[%s545_s1 + $0x18] sm:$0xff] (!%p114_p2) }
   0x7   : > { %v152_v4 = vld [vmem:[%s545_s1 + $0x20] sm:$0xff] (!%p114_p2)  ;;  %v175_v6 = vsel (!%p114_p2), %vm166_vm2, -1.0, %v460_v5  ;;  %v176_v7 = vsel (!%p114_p2), %vm167_vm3, -1.0, %v460_v5  ;;  %vm159_vm4 = vcmp.gt.f32.partialorder (!%p114_p2), %v150_v2, 0.0  ;;  %vm160_vm5 = vcmp.gt.f32.partialorder (!%p114_p2), %v151_v3, 0.0  ;;  %v153_v8 = vld [vmem:[%s545_s1 + $0x28] sm:$0xff] (!%p114_p2) }
   0x8   : > { %v184_v9 = vsel (!%p114_p2), %vm157_vm0, 1.0, %v175_v6  ;;  %v185_v10 = vsel (!%p114_p2), %vm158_vm1, 1.0, %v176_v7  ;;  %vm168_vm6 = vcmp.lt.f32.partialorder (!%p114_p2), %v150_v2, 0.0  ;;  %vm169_vm7 = vcmp.lt.f32.partialorder (!%p114_p2), %v151_v3, 0.0  ;;  %v154_v11 = vld [vmem:[%s545_s1 + $0x30] sm:$0xff] (!%p114_p2)  ;;  %v155_v15 = vld [vmem:[%s545_s1 + $0x38] sm:$0xff] (!%p114_p2) }
   0x9   : > { %v193_v12 = vpack.c.bf16 (!%p114_p2), %v185_v10, %v184_v9  ;;  %v177_v13 = vsel (!%p114_p2), %vm168_vm6, -1.0, %v460_v5  ;;  %v178_v14 = vsel (!%p114_p2), %vm169_vm7, -1.0, %v460_v5  ;;  %vm161_vm8 = vcmp.gt.f32.partialorder (!%p114_p2), %v152_v4, 0.0  ;;  %p136_p3 = scmp.lt.s32.totalorder (!%p114_p2), %s493_s17, 15  ;;  %v156_v18 = vld [vmem:[%s545_s1 + $0x40] sm:$0xff] (!%p114_p2) }
   0xa   : > { %v186_v16 = vsel (!%p114_p2), %vm159_vm4, 1.0, %v177_v13  ;;  %v187_v17 = vsel (!%p114_p2), %vm160_vm5, 1.0, %v178_v14  ;;  %vm162_vm9 = vcmp.gt.f32.partialorder (!%p114_p2), %v153_v8, 0.0  ;;  %vm170_vm10 = vcmp.lt.f32.partialorder (!%p114_p2), %v152_v4, 0.0 }
   0xb   : > { %409 = vmatprep.subr.bf16.mxu0 (!%p114_p2), %v193_v12  ;;  %427 = vmatprep.subr.bf16.mxu1 (!%p114_p2), %v193_v12  ;;  %v194_v19 = vpack.c.bf16 (!%p114_p2), %v187_v17, %v186_v16  ;;  %vm171_vm11 = vcmp.lt.f32.partialorder (!%p114_p2), %v153_v8, 0.0  ;;  %v179_v20 = vsel (!%p114_p2), %vm170_vm10, -1.0, %v460_v5  ;;  %vm163_vm12 = vcmp.gt.f32.partialorder (!%p114_p2), %v154_v11, 0.0 }
   0xc   : > { %410 = vmatpush3.bf16.msra.mxu0 (!%p114_p2), %v193_v12  ;;  %432 = vmatpush3.bf16.msra.mxu1 (!%p114_p2), %v193_v12  ;;  %v180_v21 = vsel (!%p114_p2), %vm171_vm11, -1.0, %v460_v5  ;;  %v188_v22 = vsel (!%p114_p2), %vm161_vm8, 1.0, %v179_v20  ;;  %vm164_vm13 = vcmp.gt.f32.partialorder (!%p114_p2), %v155_v15, 0.0  ;;  %vm172_vm14 = vcmp.lt.f32.partialorder (!%p114_p2), %v154_v11, 0.0 }
   0xd   : > { %s548_s17 = smov (!%p136_p3, %s493_s17), 15  ;;  %411 = vmatprep.subr.bf16.mxu0 %v194_v19  ;;  %428 = vmatprep.subr.bf16.mxu1 %v194_v19  ;;  %v189_v23 = vsel %vm162_vm9, 1.0, %v180_v21  ;;  %vm173_vm15 = vcmp.lt.f32.partialorder %v155_v15, 0.0  ;;  %v181_v24 = vsel %vm172_vm14, -1.0, %v460_v5  ;;  %vm165_vm0 = vcmp.gt.f32.partialorder %v156_v18, 0.0 }
   0xe   : > { %s387_s30 = sshll.u32 %s548_s17, 2  ;;  %v195_v25 = vpack.c.bf16 %v189_v23, %v188_v22  ;;  %v182_v26 = vsel %vm173_vm15, -1.0, %v460_v5  ;;  %v190_v27 = vsel %vm163_vm12, 1.0, %v181_v24  ;;  %vm174_vm1 = vcmp.lt.f32.partialorder %v156_v18, 0.0  ;;  %s389_s6 = sshll.u32 %s548_s17, 3 }
   0xf   : > { %s139_s5 = scalar_lea.vmem %s544_s0, %s387_s30  ;;  %v191_v28 = vsel %vm164_vm13, 1.0, %v182_v26  ;;  %v183_v29 = vsel %vm174_vm1, -1.0, %v460_v5  ;;  %vm226_vm2 = vcmask 588800   ;;  %vm239_vm3 = vcmask 1043456   ;;  %s145_s10 = scalar_lea.vmem %s546_s2, %s389_s6 }
  0x10   : > { %412 = vmatpush3.bf16.msra.mxu0 %v194_v19  ;;  %433 = vmatpush3.bf16.msra.mxu1 %v194_v19  ;;  %v448_v30 = vld [vmem:[%s139_s5] sm:$0xff]   ;;  %v449_v31 = vld [vmem:[%s139_s5 + $0x10] sm:$0xff]   ;;  %v196_v32 = vpack.c.bf16 %v191_v28, %v190_v27  ;;  %v192_v33 = vsel %vm165_vm0, 1.0, %v183_v29  ;;  %v450_v36 = vld [vmem:[%s139_s5 + $0x8] sm:$0xff]   ;;  %vm316_vm4 = vcmask 64512  }
  0x11   : > { %413 = vmatprep.subr.bf16.mxu0 %v195_v25  ;;  %429 = vmatprep.subr.bf16.mxu1 %v195_v25  ;;  %v197_v34 = vpack.c.bf16 %v192_v33, %v192_v33  ;;  %v451_v37 = vld [vmem:[%s139_s5 + $0x18] sm:$0xff]  }
  0x12   : > { %419 = vmatprep.mubr.msk.bf16.mxu0 %vm226_vm2, %v448_v30  ;;  %423 = vmatprep.mubr.msk.bf16.mxu1 %vm226_vm2, %v449_v31 }
  0x13   : > { %v241_v35 = vsel %vm239_vm3, %v197_v34, 0 }
  0x14   : > { %414 = vmatpush3.bf16.msra.mxu0 %v195_v25  ;;  %434 = vmatpush3.bf16.msra.mxu1 %v195_v25 }
  0x15   : > { %415 = vmatprep.subr.bf16.mxu0 %v196_v32  ;;  %430 = vmatprep.subr.bf16.mxu1 %v196_v32 }
  0x18   : > { %416 = vmatpush3.bf16.msra.mxu0 %v196_v32  ;;  %435 = vmatpush3.bf16.msra.mxu1 %v196_v32 }
  0x19   : > { %437 = vmatprep.subr.msk.bf16.mxu0 %vm239_vm3, %v197_v34  ;;  %438 = vmatprep.subr.msk.bf16.mxu1 %vm239_vm3, %v197_v34 }
  0x1c   : > { %418 = vmatpush3.bf16.msra.mxu0 %v241_v35  ;;  %436 = vmatpush3.bf16.msra.mxu1 %v241_v35 }
  0x1f   : > { %420 = vmatmul.mubr.msk.bf16.vlgmr.msra.gmra.mrb[0].mxu0 %vm226_vm2, %v450_v36  ;;  %424 = vmatmul.mubr.msk.bf16.vlgmr.msra.gmra.mrb[0].mxu1 %vm226_vm2, %v451_v37 }
  0xf2   : > { %v421_v38 = vpop.f32.mrb[0].mxu0  ;;  %v425_v39 = vpop.f32.mrb[0].mxu1 }
  0xf3   : > { %v310_v40 = vmul.f32 0.16666667, %v421_v38  ;;  %v314_v41 = vmul.f32 0.16666667, %v425_v39  ;;  %v277_v42 = vpop.f32.mrb[1].mxu0  ;;  %v293_v43 = vpop.f32.mrb[1].mxu1 }
  0xf4   : > { %v308_v44 = vmul.f32 0.16666667, %v277_v42  ;;  %v312_v45 = vmul.f32 0.16666667, %v293_v43  ;;  %v422_v46 = vpop.f32.mrb[2].mxu0  ;;  %v426_v47 = vpop.f32.mrb[2].mxu1 }
  0xf5   : > { %319 = vst.msk [vmem:[%s145_s10 + $0x10] sm:$0xff] %vm316_vm4, %v310_v40  ;;  %323 = vst.msk [vmem:[%s145_s10 + $0x30] sm:$0xff] %vm316_vm4, %v314_v41  ;;  %v311_v48 = vmul.f32 0.16666667, %v422_v46  ;;  %v315_v49 = vmul.f32 0.16666667, %v426_v47 }
  0xf6   : > { %v280_v50 = vpop.f32.mrb[3].mxu0  ;;  %v296_v51 = vpop.f32.mrb[3].mxu1  ;;  %317 = vst.msk [vmem:[%s145_s10] sm:$0xff] %vm316_vm4, %v308_v44  ;;  %321 = vst.msk [vmem:[%s145_s10 + $0x20] sm:$0xff] %vm316_vm4, %v312_v45 }
  0xf7   : > { %v309_v52 = vmul.f32 0.16666667, %v280_v50  ;;  %v313_v53 = vmul.f32 0.16666667, %v296_v51  ;;  %320 = vst.msk [vmem:[%s145_s10 + $0x18] sm:$0xff] %vm316_vm4, %v311_v48  ;;  %324 = vst.msk [vmem:[%s145_s10 + $0x38] sm:$0xff] %vm316_vm4, %v315_v49 }
  0xf9   : > { %318 = vst.msk [vmem:[%s145_s10 + $0x8] sm:$0xff] %vm316_vm4, %v309_v52  ;;  %322 = vst.msk [vmem:[%s145_s10 + $0x28] sm:$0xff] %vm316_vm4, %v313_v53 }
  0xfa PF: > { %s12_s9 = sadd.s32 1, %s458_s9  }
  0xfb   : > { %p9_p4 = scmp.ge.s32.totalorder %s12_s9, 4  }
  0xfd   :  { %11 = sbr.rel (!%p9_p4) target bundleno = 1 (0x1), region = 58 }

</bundles_post_ra>
